<compile_context>
chip_gen: v5e
topology: v5e:2x2
jax: 0.10.0
libtpu: 0.0.40
codegen_flags: <defaults>
</compile_context>

<pallas_src>
import jax
import jax.numpy as jnp
from jax.experimental import pallas as pl
from jax.experimental.pallas import tpu as pltpu

# SELU constants (match torch.nn.SELU)
_SELU_ALPHA = 1.6732632423543772
_SELU_SCALE = 1.0507009873554805


def _selu(x):
    # Clamp the exp argument: jnp.where evaluates both branches, so exp of a
    # large positive would otherwise produce a transient (masked) inf.
    neg = _SELU_ALPHA * (jnp.exp(jnp.minimum(x, 0.0)) - 1.0)
    return _SELU_SCALE * jnp.where(x > 0, x, neg)


def _generator_kernel(x_ref, w1_ref, b1_ref, w2_ref, b2_ref, w3_ref, b3_ref, o_ref):
    """Feature-major fused 3-layer MLP on one batch tile.

    x_ref:  (in,  TB)   batch tile (batch on the 128-wide lane dim)
    wN_ref: (out, in)   PyTorch-layout weights, VMEM-resident across the grid
    bN_ref: (out, 1)    f32 bias columns
    o_ref:  (out, TB)
    """
    cdt = w1_ref.dtype  # MXU operand dtype (f32, or bf16 on v6e/v7x)
    # Full f32 accuracy (bf16_6x passes) when operands are f32.
    prec = (jax.lax.Precision.HIGHEST if cdt == jnp.float32
            else jax.lax.Precision.DEFAULT)

    x = x_ref[...].astype(cdt)                                     # (in, TB)
    h = jnp.dot(w1_ref[...], x,
                preferred_element_type=jnp.float32, precision=prec)  # (H, TB)
    h = _selu(h + b1_ref[...])                                     # f32 bias/SELU
    h = jnp.dot(w2_ref[...], h.astype(cdt),
                preferred_element_type=jnp.float32, precision=prec)  # (H, TB)
    h = _selu(h + b2_ref[...])
    h = jnp.dot(w3_ref[...], h.astype(cdt),
                preferred_element_type=jnp.float32, precision=prec)  # (out, TB)
    o_ref[...] = _selu(h + b3_ref[...]).astype(o_ref.dtype)


def _round_up(n, m):
    return ((n + m - 1) // m) * m


def generator_forward(x, params, *, block_batch=1024, matmul_dtype=None):
    """Forward pass of the Generator.

    x:      (B, input_size) f32, PyTorch row-major layout.
    params: dict w1,b1,w2,b2,w3,b3 with weights in PyTorch (out, in) layout
            and biases (out,).
    block_batch: batch tile size target (rounded to a multiple of 128 lanes).
    matmul_dtype: None -> f32 MXU operands; jnp.bfloat16 recommended on
                  v6e/v7x (halves weight DMA/VMEM, single-pass MXU).
                  Accumulation, bias-add and SELU are always f32.
    """
    w1, b1, w2, b2, w3, b3 = (params[k] for k in ("w1", "b1", "w2", "b2", "w3", "b3"))
    B, in_size = x.shape
    hidden = w1.shape[0]
    out_size = w3.shape[0]

    # Batch tile: multiple of 128 (lane width) so every activation/output tile
    # is lane-dense; pad B up so the grid divides evenly (pad cols are sliced
    # off after the call and never pollute valid columns — batch is the MXU N
    # dim, not a contraction dim).
    tb = _round_up(min(block_batch, _round_up(B, 128)), 128)
    b_pad = _round_up(B, tb)

    x_t = jnp.pad(x.astype(jnp.float32).T, ((0, 0), (0, b_pad - B)))  # (in, B_pad)

    cdt = jnp.float32 if matmul_dtype is None else matmul_dtype
    w1c, w2c, w3c = (w.astype(cdt) for w in (w1, w2, w3))
    # Bias-add / SELU stay f32 on every generation (v5e has no bf16 VPU/EUP).
    b1c, b2c, b3c = (b.astype(jnp.float32).reshape(-1, 1) for b in (b1, b2, b3))

    # Whole-array blocks with constant index maps -> fetched once, resident in
    # VMEM across all grid steps.
    const = lambda a: pl.BlockSpec(a.shape, lambda i: (0,) * a.ndim)

    flops = 2 * B * (in_size * hidden + hidden * hidden + hidden * out_size)
    transcendentals = B * (2 * hidden + out_size)
    bytes_accessed = 4 * (x.size + B * out_size
                          + w1.size + w2.size + w3.size
                          + b1.size + b2.size + b3.size)

    out_t = pl.pallas_call(
        _generator_kernel,
        out_shape=jax.ShapeDtypeStruct((out_size, b_pad), jnp.float32),
        grid=(b_pad // tb,),
        in_specs=[
            pl.BlockSpec((in_size, tb), lambda i: (0, i)),   # batch-tiled input
            const(w1c), const(b1c),                          # VMEM-resident params
            const(w2c), const(b2c),
            const(w3c), const(b3c),
        ],
        out_specs=pl.BlockSpec((out_size, tb), lambda i: (0, i)),
        compiler_params=pltpu.CompilerParams(
            # Batch axis is independent -> shard across both v7x TensorCores.
            dimension_semantics=("parallel",),
        ),
        cost_estimate=pl.CostEstimate(
            flops=int(flops),
            transcendentals=int(transcendentals),
            bytes_accessed=int(bytes_accessed),
        ),
    )(x_t, w1c, b1c, w2c, b2c, w3c, b3c)

    return out_t[:, :B].T                                    # (B, out_size)


def init_generator_params(key, input_size, hidden_size, output_size):
    """Deterministic PyTorch-Linear-style uniform fan-in init, native PyTorch
    layout: W (out_features, in_features), b (out_features,)."""
    def linear(k, fan_in, fan_out):
        kw, kb = jax.random.split(k)
        bound = 1.0 / jnp.sqrt(fan_in)
        w = jax.random.uniform(kw, (fan_out, fan_in), jnp.float32, -bound, bound)
        b = jax.random.uniform(kb, (fan_out,), jnp.float32, -bound, bound)
        return w, b

    k1, k2, k3 = jax.random.split(key, 3)
    w1, b1 = linear(k1, input_size, hidden_size)
    w2, b2 = linear(k2, hidden_size, hidden_size)
    w3, b3 = linear(k3, hidden_size, output_size)
    return dict(w1=w1, b1=b1, w2=w2, b2=b2, w3=w3, b3=b3)


def _reference_forward(x, p):
    dot = lambda a, b: jnp.dot(a, b, precision=jax.lax.Precision.HIGHEST)
    def selu(v):
        return _SELU_SCALE * jnp.where(v > 0, v, _SELU_ALPHA * (jnp.exp(v) - 1.0))
    h = selu(dot(x, p["w1"].T) + p["b1"])
    h = selu(dot(h, p["w2"].T) + p["b2"])
    return selu(dot(h, p["w3"].T) + p["b3"])


if __name__ == "__main__":
    input_size, hidden_size, output_size = 4, 32, 8

    key = jax.random.PRNGKey(0)
    kx, kp = jax.random.split(key)
    params = init_generator_params(kp, input_size, hidden_size, output_size)

    # Small batch: single grid step.
    x_small = jax.random.normal(kx, (8, input_size), dtype=jnp.float32)
    out = generator_forward(x_small, params)
    jax.block_until_ready(out)
    ref = _reference_forward(x_small, params)
    assert out.shape == (8, output_size)
    assert jnp.allclose(out, ref, atol=1e-4, rtol=1e-4)

    # Non-divisible batch with a 128-row tile: exercises multi-step grid,
    # resident weights across steps, batch padding, and the parallel axis.
    x_big = jax.random.normal(kx, (300, input_size), dtype=jnp.float32)
    out_big = generator_forward(x_big, params, block_batch=128)
    jax.block_until_ready(out_big)
    ref_big = _reference_forward(x_big, params)
    assert out_big.shape == (300, output_size)
    assert jnp.allclose(out_big, ref_big, atol=1e-4, rtol=1e-4)

    # bf16 MXU-operand path (v6e/v7x recommendation), f32 accumulate + SELU.
    out_bf16 = generator_forward(x_big, params, block_batch=128,
                                 matmul_dtype=jnp.bfloat16)
    jax.block_until_ready(out_bf16)
    assert out_bf16.shape == (300, output_size)
    assert jnp.allclose(out_bf16, ref_big, atol=5e-2, rtol=5e-2)

    print("KERNEL_OK")
</pallas_src>

<mosaic_0001>
module attributes {stable_mosaic.version = 11 : i64} {
  func.func @_generator_kernel(%arg0: i32, %arg1: memref<4x128xf32, #tpu.memory_space<vmem>>, %arg2: memref<32x4xf32, #tpu.memory_space<vmem>>, %arg3: memref<32x1xf32, #tpu.memory_space<vmem>>, %arg4: memref<32x32xf32, #tpu.memory_space<vmem>>, %arg5: memref<32x1xf32, #tpu.memory_space<vmem>>, %arg6: memref<8x32xf32, #tpu.memory_space<vmem>>, %arg7: memref<8x1xf32, #tpu.memory_space<vmem>>, %arg8: memref<8x128xf32, #tpu.memory_space<vmem>>) attributes {dimension_semantics = [#tpu.dimension_semantics<parallel>], iteration_bounds = array<i64: 1>, scalar_prefetch = 0 : i64, scratch_operands = 0 : i64, tpu.core_type = #tpu.core_type<tc>, window_params = [{transform_indices = @transform_0, window_bounds = array<i64: 4, 128>}, {pipeline_mode = #tpu.pipeline_mode<synchronous>, transform_indices = @transform_1, window_bounds = array<i64: 32, 4>}, {pipeline_mode = #tpu.pipeline_mode<synchronous>, transform_indices = @transform_2, window_bounds = array<i64: 32, 1>}, {pipeline_mode = #tpu.pipeline_mode<synchronous>, transform_indices = @transform_3, window_bounds = array<i64: 32, 32>}, {pipeline_mode = #tpu.pipeline_mode<synchronous>, transform_indices = @transform_4, window_bounds = array<i64: 32, 1>}, {pipeline_mode = #tpu.pipeline_mode<synchronous>, transform_indices = @transform_5, window_bounds = array<i64: 8, 32>}, {pipeline_mode = #tpu.pipeline_mode<synchronous>, transform_indices = @transform_6, window_bounds = array<i64: 8, 1>}, {transform_indices = @transform_7, window_bounds = array<i64: 8, 128>}]} {
    %c0 = arith.constant 0 : index
    %c0_0 = arith.constant 0 : index
    %0 = vector.load %arg1[%c0, %c0_0] : memref<4x128xf32, #tpu.memory_space<vmem>>, vector<4x128xf32>
    %c0_1 = arith.constant 0 : index
    %c0_2 = arith.constant 0 : index
    %1 = vector.load %arg2[%c0_1, %c0_2] : memref<32x4xf32, #tpu.memory_space<vmem>>, vector<32x4xf32>
    %cst = arith.constant dense<0.000000e+00> : vector<32x128xf32>
    %2 = tpu.matmul %1, %0, %cst {dimension_numbers = #tpu.dot_dimension_numbers<[1], [0], [0], [1], [0, 0, 1, 1], [], []>, precision = #tpu.contract_precision<fp32>} : vector<32x4xf32>, vector<4x128xf32>, vector<32x128xf32> -> vector<32x128xf32>
    %c0_3 = arith.constant 0 : index
    %c0_4 = arith.constant 0 : index
    %3 = vector.load %arg3[%c0_3, %c0_4] : memref<32x1xf32, #tpu.memory_space<vmem>>, vector<32x1xf32>
    %4 = vector.broadcast %3 : vector<32x1xf32> to vector<32x128xf32>
    %5 = arith.addf %2, %4 : vector<32x128xf32>
    %cst_5 = arith.constant 0.000000e+00 : f32
    %6 = vector.broadcast %cst_5 : f32 to vector<32x128xf32>
    %7 = arith.minimumf %5, %6 : vector<32x128xf32>
    %8 = math.exp %7 : vector<32x128xf32>
    %cst_6 = arith.constant 1.000000e+00 : f32
    %9 = vector.broadcast %cst_6 : f32 to vector<32x128xf32>
    %10 = arith.subf %8, %9 : vector<32x128xf32>
    %cst_7 = arith.constant 1.67326319 : f32
    %11 = vector.broadcast %cst_7 : f32 to vector<32x128xf32>
    %12 = arith.mulf %11, %10 : vector<32x128xf32>
    %cst_8 = arith.constant 0.000000e+00 : f32
    %13 = vector.broadcast %cst_8 : f32 to vector<32x128xf32>
    %14 = arith.cmpf ogt, %5, %13 : vector<32x128xf32>
    %15 = arith.select %14, %5, %12 : vector<32x128xi1>, vector<32x128xf32>
    %cst_9 = arith.constant 1.05070102 : f32
    %16 = vector.broadcast %cst_9 : f32 to vector<32x128xf32>
    %17 = arith.mulf %16, %15 : vector<32x128xf32>
    %c0_10 = arith.constant 0 : index
    %c0_11 = arith.constant 0 : index
    %18 = vector.load %arg4[%c0_10, %c0_11] : memref<32x32xf32, #tpu.memory_space<vmem>>, vector<32x32xf32>
    %cst_12 = arith.constant dense<0.000000e+00> : vector<32x128xf32>
    %19 = tpu.matmul %18, %17, %cst_12 {dimension_numbers = #tpu.dot_dimension_numbers<[1], [0], [0], [1], [0, 0, 1, 1], [], []>, precision = #tpu.contract_precision<fp32>} : vector<32x32xf32>, vector<32x128xf32>, vector<32x128xf32> -> vector<32x128xf32>
    %c0_13 = arith.constant 0 : index
    %c0_14 = arith.constant 0 : index
    %20 = vector.load %arg5[%c0_13, %c0_14] : memref<32x1xf32, #tpu.memory_space<vmem>>, vector<32x1xf32>
    %21 = vector.broadcast %20 : vector<32x1xf32> to vector<32x128xf32>
    %22 = arith.addf %19, %21 : vector<32x128xf32>
    %cst_15 = arith.constant 0.000000e+00 : f32
    %23 = vector.broadcast %cst_15 : f32 to vector<32x128xf32>
    %24 = arith.minimumf %22, %23 : vector<32x128xf32>
    %25 = math.exp %24 : vector<32x128xf32>
    %cst_16 = arith.constant 1.000000e+00 : f32
    %26 = vector.broadcast %cst_16 : f32 to vector<32x128xf32>
    %27 = arith.subf %25, %26 : vector<32x128xf32>
    %cst_17 = arith.constant 1.67326319 : f32
    %28 = vector.broadcast %cst_17 : f32 to vector<32x128xf32>
    %29 = arith.mulf %28, %27 : vector<32x128xf32>
    %cst_18 = arith.constant 0.000000e+00 : f32
    %30 = vector.broadcast %cst_18 : f32 to vector<32x128xf32>
    %31 = arith.cmpf ogt, %22, %30 : vector<32x128xf32>
    %32 = arith.select %31, %22, %29 : vector<32x128xi1>, vector<32x128xf32>
    %cst_19 = arith.constant 1.05070102 : f32
    %33 = vector.broadcast %cst_19 : f32 to vector<32x128xf32>
    %34 = arith.mulf %33, %32 : vector<32x128xf32>
    %c0_20 = arith.constant 0 : index
    %c0_21 = arith.constant 0 : index
    %35 = vector.load %arg6[%c0_20, %c0_21] : memref<8x32xf32, #tpu.memory_space<vmem>>, vector<8x32xf32>
    %cst_22 = arith.constant dense<0.000000e+00> : vector<8x128xf32>
    %36 = tpu.matmul %35, %34, %cst_22 {dimension_numbers = #tpu.dot_dimension_numbers<[1], [0], [0], [1], [0, 0, 1, 1], [], []>, precision = #tpu.contract_precision<fp32>} : vector<8x32xf32>, vector<32x128xf32>, vector<8x128xf32> -> vector<8x128xf32>
    %c0_23 = arith.constant 0 : index
    %c0_24 = arith.constant 0 : index
    %37 = vector.load %arg7[%c0_23, %c0_24] : memref<8x1xf32, #tpu.memory_space<vmem>>, vector<8x1xf32>
    %38 = vector.broadcast %37 : vector<8x1xf32> to vector<8x128xf32>
    %39 = arith.addf %36, %38 : vector<8x128xf32>
    %cst_25 = arith.constant 0.000000e+00 : f32
    %40 = vector.broadcast %cst_25 : f32 to vector<8x128xf32>
    %41 = arith.minimumf %39, %40 : vector<8x128xf32>
    %42 = math.exp %41 : vector<8x128xf32>
    %cst_26 = arith.constant 1.000000e+00 : f32
    %43 = vector.broadcast %cst_26 : f32 to vector<8x128xf32>
    %44 = arith.subf %42, %43 : vector<8x128xf32>
    %cst_27 = arith.constant 1.67326319 : f32
    %45 = vector.broadcast %cst_27 : f32 to vector<8x128xf32>
    %46 = arith.mulf %45, %44 : vector<8x128xf32>
    %cst_28 = arith.constant 0.000000e+00 : f32
    %47 = vector.broadcast %cst_28 : f32 to vector<8x128xf32>
    %48 = arith.cmpf ogt, %39, %47 : vector<8x128xf32>
    %49 = arith.select %48, %39, %46 : vector<8x128xi1>, vector<8x128xf32>
    %cst_29 = arith.constant 1.05070102 : f32
    %50 = vector.broadcast %cst_29 : f32 to vector<8x128xf32>
    %51 = arith.mulf %50, %49 : vector<8x128xf32>
    %c0_30 = arith.constant 0 : index
    %c0_31 = arith.constant 0 : index
    %52 = vector.load %arg8[%c0_30, %c0_31] : memref<8x128xf32, #tpu.memory_space<vmem>>, vector<8x128xf32>
    tpu.vector_store %arg8[%c0_30, %c0_31], %51 {strides = array<i32>} : memref<8x128xf32, #tpu.memory_space<vmem>>, vector<8x128xf32>,
    return
  }
  func.func @transform_0(%arg0: i32) -> (i32, i32) {
    %c0_i32 = arith.constant 0 : i32
    %c0_i32_0 = arith.constant 0 : i32
    return %c0_i32, %arg0 : i32, i32
  }
  func.func @transform_1(%arg0: i32) -> (i32, i32) {
    %c0_i32 = arith.constant 0 : i32
    %c0_i32_0 = arith.constant 0 : i32
    %c0_i32_1 = arith.constant 0 : i32
    return %c0_i32, %c0_i32_0 : i32, i32
  }
  func.func @transform_2(%arg0: i32) -> (i32, i32) {
    %c0_i32 = arith.constant 0 : i32
    %c0_i32_0 = arith.constant 0 : i32
    %c0_i32_1 = arith.constant 0 : i32
    return %c0_i32, %c0_i32_0 : i32, i32
  }
  func.func @transform_3(%arg0: i32) -> (i32, i32) {
    %c0_i32 = arith.constant 0 : i32
    %c0_i32_0 = arith.constant 0 : i32
    %c0_i32_1 = arith.constant 0 : i32
    return %c0_i32, %c0_i32_0 : i32, i32
  }
  func.func @transform_4(%arg0: i32) -> (i32, i32) {
    %c0_i32 = arith.constant 0 : i32
    %c0_i32_0 = arith.constant 0 : i32
    %c0_i32_1 = arith.constant 0 : i32
    return %c0_i32, %c0_i32_0 : i32, i32
  }
  func.func @transform_5(%arg0: i32) -> (i32, i32) {
    %c0_i32 = arith.constant 0 : i32
    %c0_i32_0 = arith.constant 0 : i32
    %c0_i32_1 = arith.constant 0 : i32
    return %c0_i32, %c0_i32_0 : i32, i32
  }
  func.func @transform_6(%arg0: i32) -> (i32, i32) {
    %c0_i32 = arith.constant 0 : i32
    %c0_i32_0 = arith.constant 0 : i32
    %c0_i32_1 = arith.constant 0 : i32
    return %c0_i32, %c0_i32_0 : i32, i32
  }
  func.func @transform_7(%arg0: i32) -> (i32, i32) {
    %c0_i32 = arith.constant 0 : i32
    %c0_i32_0 = arith.constant 0 : i32
    return %c0_i32, %arg0 : i32, i32
  }
}

</mosaic_0001>

<bundles_post_ra>
// kernel: tpu_custom_call.1
= control target key start
LH: loop header
LB: loop body
LE: loop exit
PB: predicated region body
PF: predicated region fallthrough
CT: control target
= control target key end

     0   :  { %vm69_vm0 = vcmask 1043456   ;;  %vm56_vm1 = vcmask 31744   ;;  %v973_v4 = vmov 0   ;;  %s1132_s0 = inlined_call_operand.vmem [shape: f32[4,128], index: 0, kind: input, shape index: {}]   ;;  %s1133_s1 = inlined_call_operand.vmem [shape: f32[32,4], index: 1, kind: input, shape index: {}]   ;;  %s1134_s2 = inlined_call_operand.vmem [shape: f32[32,1], index: 2, kind: input, shape index: {}]   ;;  %s1135_s3 = inlined_call_operand.vmem [shape: f32[32,32], index: 3, kind: input, shape index: {}]   ;;  %s1136_s4 = inlined_call_operand.vmem [shape: f32[32,1], index: 4, kind: input, shape index: {}]   ;;  %s1137_s5 = inlined_call_operand.vmem [shape: f32[8,32], index: 5, kind: input, shape index: {}]   ;;  %s1138_s6 = inlined_call_operand.vmem [shape: f32[8,1], index: 6, kind: input, shape index: {}]   ;;  %s1139_s7 = inlined_call_operand.hbm [shape: f32[8,128], index: 7, kind: output, shape index: {}]  }
   0x1   :  { %v27_v0 = vld [vmem:[%s1132_s0] sm:$0xf]  ;;  %927 = vset.pattern.permute.xlu1 %v973_v4  ;;  %v33_v5 = vld [vmem:[%s1134_s2 + $0x8] sm:$0xff]  ;;  %926 = vset.pattern.permute.xlu0 %v973_v4  ;;  %v30_v10 = vld [vmem:[%s1133_s1 + $0x10] sm:$0xff] }
   0x2   :  { %v28_v1 = vld [vmem:[%s1133_s1] sm:$0xff]  ;;  %v71_v2 = vsel %vm69_vm0, %v27_v0, 0  ;;  %v29_v6 = vld [vmem:[%s1133_s1 + $0x8] sm:$0xff]  ;;  %43 = vperm.xlu1 %927, %v33_v5   ;;  %v35_v11 = vld [vmem:[%s1134_s2 + $0x18] sm:$0xff]  ;;  %928 = vset.pattern.permute.xlu2 %v973_v4 }
   0x3   :  { %v58_v3 = vsel %vm56_vm1, %v28_v1, 0  ;;  %v88_v7 = vand.u32 4294901760, %v71_v2  ;;  %v61_v9 = vsel %vm56_vm1, %v29_v6, 0  ;;  %53 = vperm.xlu0 %926, %v35_v11  }
   0x4   :  { %v1028_v8 = vand.u32 4294901760, %v58_v3  ;;  %v98_v12 = vand.u32 4294901760, %v61_v9 }
   0x5   :  { %12 = vsyncpa [#allocation3], 0  ;;  %v139_v13 = vsub.f32 %v71_v2, %v88_v7  ;;  %89 = vmatpush.msra.mxu0 %v88_v7  ;;  %216 = vmatpush.msra.mxu3 %v88_v7  ;;  %v64_v16 = vsel %vm56_vm1, %v30_v10, 0  ;;  %v32_v19 = vld [vmem:[%s1134_s2] sm:$0xff]  ;;  %v34_v24 = vld [vmem:[%s1134_s2 + $0x10] sm:$0xff]  ;;  %vm372_vm2 = vcmask 261120  }
   0x6   :  { %v91_v14 = vsub.f32 %v58_v3, %v1028_v8  ;;  %v99_v15 = vsub.f32 %v61_v9, %v98_v12  ;;  %v106_v23 = vand.u32 4294901760, %v64_v16  ;;  %v31_v27 = vld [vmem:[%s1133_s1 + $0x18] sm:$0xff]  ;;  %v349_v39 = vld [vmem:[%s1136_s4 + $0x8] sm:$0xff]  ;;  %v348_v41 = vld [vmem:[%s1136_s4] sm:$0xff]  ;;  %s906_s12 = sshll.u32 %s1139_s7, 4  ;;  %s907_s12 = int_to_ptr.hbm [resolvable:$true] %s906_s12 }
   0x7   :  { %178 = vmatpush.msra.mxu2 %v139_v13  ;;  %v140_v18 = vand.u32 4294901760, %v139_v13  ;;  %v67_v30 = vsel %vm56_vm1, %v31_v27, 0 }
   0x8   :  { %v92_v17 = vand.u32 4294901760, %v91_v14  ;;  %181 = vmatmul.f32.vlgmr.msra.gmra.mxu2 %v91_v14  ;;  %v100_v22 = vand.u32 4294901760, %v99_v15  ;;  %v107_v29 = vsub.f32 %v64_v16, %v106_v23  ;;  %v114_v33 = vand.u32 4294901760, %v67_v30 }
   0x9   :  { %v141_v21 = vsub.f32 %v139_v13, %v140_v18  ;;  %260 = vmatpush.msrb.mxu0 %v140_v18 }
   0xa   :  { %v93_v20 = vsub.f32 %v91_v14, %v92_v17  ;;  %220 = vmatmul.f32.vlgmr.msra.gmra.mxu3 %v92_v17  ;;  %38 = vperm.xlu1 %927, %v32_v19   ;;  %v101_v28 = vsub.f32 %v99_v15, %v100_v22  ;;  %v108_v32 = vand.u32 4294901760, %v107_v29  ;;  %v115_v35 = vsub.f32 %v67_v30, %v114_v33 }
   0xb   :  { %v142_v26 = vand.u32 4294901760, %v141_v21  ;;  %48 = vperm.xlu0 %926, %v34_v24  }
   0xc   :  { %v94_v25 = vand.u32 4294901760, %v93_v20  ;;  %v102_v31 = vand.u32 4294901760, %v101_v28  ;;  %v109_v34 = vsub.f32 %v107_v29, %v108_v32  ;;  %v116_v37 = vand.u32 4294901760, %v115_v35 }
   0xd   :  { %143 = vmatpush.msra.mxu1 %v142_v26 }
   0xe   :  { %95 = vmatmul.f32.vlgmr.msra.gmra.mxu0 %v94_v25  ;;  %145 = vmatmul.f32.vlgmr.msra.gmra.mxu1 %v1028_v8  ;;  %v110_v36 = vand.u32 4294901760, %v109_v34  ;;  %v117_v38 = vsub.f32 %v115_v35, %v116_v37 }
   0xf   :  { %294 = vmatpush.msrb.mxu1 %v88_v7 }
  0x10   :  { %186 = vmatmul.f32.gmra.mxu2 %v99_v15  ;;  %v118_v40 = vand.u32 4294901760, %v117_v38 }
  0x12   :  { %226 = vmatmul.f32.gmra.mxu3 %v100_v22  ;;  %354 = vperm.xlu1 %927, %v348_v41   ;;  %v344_v41 = vld [vmem:[%s1135_s3] sm:$0xff] }
  0x13   :  { %359 = vperm.xlu0 %926, %v349_v39  }
  0x16   :  { %103 = vmatmul.f32.gmra.mxu0 %v102_v31  ;;  %149 = vmatmul.f32.gmra.mxu1 %v98_v12 }
  0x18   :  { %191 = vmatmul.f32.gmra.mxu2 %v107_v29 }
  0x1a   :  { %232 = vmatmul.f32.gmra.mxu3 %v108_v32 }
  0x1e   :  { %111 = vmatmul.f32.gmra.mxu0 %v110_v36  ;;  %153 = vmatmul.f32.gmra.mxu1 %v106_v23 }
  0x20   :  { %196 = vmatmul.f32.gmra.mxu2 %v115_v35 }
  0x22   :  { %238 = vmatmul.f32.gmra.mxu3 %v116_v37 }
  0x26   :  { %119 = vmatmul.f32.gmra.mxu0 %v118_v40  ;;  %157 = vmatmul.f32.gmra.mxu1 %v114_v33 }
  0x2e   :  { %262 = vmatmul.f32.vlgmr.msrb.gmra.mxu0 %v1028_v8  ;;  %296 = vmatmul.f32.vlgmr.msrb.gmra.mxu1 %v1028_v8 }
  0x36   :  { %266 = vmatmul.f32.gmra.mxu0 %v98_v12  ;;  %300 = vmatmul.f32.gmra.mxu1 %v98_v12 }
  0x3e   :  { %270 = vmatmul.f32.gmra.mxu0 %v106_v23  ;;  %304 = vmatmul.f32.gmra.mxu1 %v106_v23 }
  0x46   :  { %274 = vmatmul.f32.gmra.mxu0 %v114_v33  ;;  %308 = vmatmul.f32.gmra.mxu1 %v114_v33 }
  0x74   :  { %v44_v46 = vpop.permute.xlu1 %43 }
  0x75   :  { %v54_v51 = vpop.permute.xlu0 %53 }
  0x7c   :  { %v39_v50 = vpop.permute.xlu1 %38 }
  0x7d   :  { %v49_v61 = vpop.permute.xlu0 %48 }
  0x8b   :  { %v96_v42 = vpop.f32.mrf.mxu0  ;;  %v146_v43 = vpop.f32.mrf.mxu1 }
  0x8c   :  { %v182_v49 = vpop.f32.mrf.mxu2  ;;  %v97_v53 = vadd.f32 %v96_v42, %v39_v50 }
  0x8d   :  { %v221_v52 = vpop.f32.mrf.mxu3 }
  0x8e   :  { %v147_v56 = vadd.f32 %v146_v43, %v97_v53 }
  0x90   :  { %v183_v59 = vadd.f32 %v182_v49, %v147_v56 }
  0x92   :  { %v222_v1 = vadd.f32 %v221_v52, %v183_v59 }
  0x93   :  { %v104_v44 = vpop.f32.mrf.mxu0  ;;  %v150_v45 = vpop.f32.mrf.mxu1 }
  0x94   :  { %v105_v57 = vadd.f32 %v104_v44, %v44_v46  ;;  %v187_v58 = vpop.f32.mrf.mxu2  ;;  %v374_v46 = vsel %vm372_vm2, %v344_v41, 0  ;;  %v351_v41 = vld [vmem:[%s1136_s4 + $0x18] sm:$0xff] }
  0x95   :  { %v227_v62 = vpop.f32.mrf.mxu3  ;;  %369 = vperm.xlu2 %928, %v351_v41  }
  0x96   :  { %v151_v60 = vadd.f32 %v150_v45, %v105_v57 }
  0x98   :  { %v188_v2 = vadd.f32 %v187_v58, %v151_v60 }
  0x9a   :  { %v228_v6 = vadd.f32 %v227_v62, %v188_v2 }
  0x9b   :  { %v112_v47 = vpop.f32.mrf.mxu0  ;;  %v154_v48 = vpop.f32.mrf.mxu1 }
  0x9c   :  { %v113_v3 = vadd.f32 %v112_v47, %v49_v61  ;;  %v192_v5 = vpop.f32.mrf.mxu2 }
  0x9d   :  { %v233_v12 = vpop.f32.mrf.mxu3 }
  0x9e   :  { %v155_v7 = vadd.f32 %v154_v48, %v113_v3 }
  0xa0   :  { %v193_v13 = vadd.f32 %v192_v5, %v155_v7 }
  0xa2   :  { %v234_v18 = vadd.f32 %v233_v12, %v193_v13 }
  0xa3   :  { %v120_v54 = vpop.f32.mrf.mxu0  ;;  %v158_v55 = vpop.f32.mrf.mxu1 }
  0xa4   :  { %v121_v14 = vadd.f32 %v120_v54, %v54_v51  ;;  %v197_v21 = vpop.f32.mrf.mxu2  ;;  %v1062_v51 = vand.u32 4294901760, %v374_v46  ;;  %v345_v54 = vld [vmem:[%s1135_s3 + $0x8] sm:$0xff] }
  0xa5   :  { %v239_v28 = vpop.f32.mrf.mxu3  ;;  %v377_v61 = vsel %vm372_vm2, %v345_v54, 0 }
  0xa6   :  { %v159_v19 = vadd.f32 %v158_v55, %v121_v14  ;;  %v406_v58 = vsub.f32 %v374_v46, %v1062_v51  ;;  %v1073_v2 = vand.u32 4294901760, %v377_v61 }
  0xa8   :  { %v198_v26 = vadd.f32 %v197_v21, %v159_v19 }
  0xaa   :  { %v240_v30 = vadd.f32 %v239_v28, %v198_v26 }
  0xab   :  { %v263_v63 = vpop.f32.mrf.mxu0  ;;  %v297_v0 = vpop.f32.mrf.mxu1 }
  0xac   :  { %v264_v4 = vadd.f32 %v263_v63, %v222_v1  ;;  %v407_v1 = vand.u32 4294901760, %v406_v58 }
  0xae   :  { %v298_v9 = vadd.f32 %v297_v0, %v264_v4 }
  0xb0   :  { %v312_v16 = vmin.f32 %v298_v9, 0.0  ;;  %vm332_vm5 = vcmp.gt.f32.partialorder %v298_v9, 0.0 }
  0xb2   :  { %v316_v23 = vmul.f32 1.442695, %v312_v16 }
  0xb3   :  { %v267_v8 = vpop.f32.mrf.mxu0  ;;  %v301_v11 = vpop.f32.mrf.mxu1 }
  0xb4   :  { %v268_v10 = vadd.f32 %v267_v8, %v228_v6  ;;  %v346_v6 = vld [vmem:[%s1135_s3 + $0x10] sm:$0xff] }
  0xb5   :  { %v380_v14 = vsel %vm372_vm2, %v346_v6, 0 }
  0xb6   :  { %v302_v15 = vadd.f32 %v301_v11, %v268_v10  ;;  %v414_v10 = vsub.f32 %v377_v61, %v1073_v2  ;;  %v1087_v19 = vand.u32 4294901760, %v380_v14 }
  0xb8   :  { %v313_v17 = vmin.f32 %v302_v15, 0.0  ;;  %vm333_vm3 = vcmp.gt.f32.partialorder %v302_v15, 0.0 }
  0xba   :  { %v318_v20 = vmul.f32 1.442695, %v313_v17 }
  0xbb   :  { %v271_v22 = vpop.f32.mrf.mxu0  ;;  %v305_v25 = vpop.f32.mrf.mxu1 }
  0xbc   :  { %v272_v24 = vadd.f32 %v271_v22, %v234_v18  ;;  %929 = vpow2.f32 %v318_v20  ;;  %v415_v18 = vand.u32 4294901760, %v414_v10 }
  0xbd   :  { %931 = vpow2.f32 %v316_v23  ;;  %v347_v23 = vld [vmem:[%s1135_s3 + $0x18] sm:$0xff] }
  0xbe   :  { %v306_v27 = vadd.f32 %v305_v25, %v272_v24  ;;  %v416_v26 = vsub.f32 %v414_v10, %v415_v18 }
  0xc0   :  { %v314_v29 = vmin.f32 %v306_v27, 0.0  ;;  %vm334_vm4 = vcmp.gt.f32.partialorder %v306_v27, 0.0 }
  0xc2   :  { %v320_v31 = vmul.f32 1.442695, %v314_v29  ;;  %v930_v33 = vpop.eup %929 }
  0xc3   :  { %v275_v32 = vpop.f32.mrf.mxu0  ;;  %v309_v35 = vpop.f32.mrf.mxu1  ;;  %v916_v38 = vadd.f32 -1.0, %v930_v33 }
  0xc4   :  { %933 = vpow2.f32 %v320_v31  ;;  %v276_v34 = vadd.f32 %v275_v32, %v240_v30  ;;  %v932_v36 = vpop.eup %931  ;;  %v383_v30 = vsel %vm372_vm2, %v347_v23, 0  ;;  %v417_v32 = vand.u32 4294901760, %v416_v26 }
  0xc5   :  { %v915_v40 = vadd.f32 -1.0, %v932_v36  ;;  %v329_v44 = vmul.f32 1.6732632, %v916_v38 }
  0xc6   :  { %v310_v37 = vadd.f32 %v309_v35, %v276_v34  ;;  %v429_v34 = vand.u32 4294901760, %v383_v30 }
  0xc7   :  { %v328_v47 = vmul.f32 1.6732632, %v915_v40  ;;  %v337_v49 = vsel %vm333_vm3, %v302_v15, %v329_v44  ;;  %v696_v44 = vld [vmem:[%s1138_s6] sm:$0xff] }
  0xc8   :  { %v315_v39 = vmin.f32 %v310_v37, 0.0  ;;  %v341_v56 = vmul.f32 1.050701, %v337_v49  ;;  %vm335_vm6 = vcmp.gt.f32.partialorder %v310_v37, 0.0 }
  0xc9   :  { %v336_v53 = vsel %vm332_vm5, %v298_v9, %v328_v47  ;;  %v408_v9 = vsub.f32 %v406_v58, %v407_v1 }
  0xca   :  { %v934_v42 = vpop.eup %933  ;;  %v322_v43 = vmul.f32 1.442695, %v315_v39  ;;  %v340_v59 = vmul.f32 1.050701, %v336_v53  ;;  %v1071_v63 = vand.u32 4294901760, %v341_v56 }
  0xcb   :  { %v917_v45 = vadd.f32 -1.0, %v934_v42  ;;  %v409_v17 = vand.u32 4294901760, %v408_v9 }
  0xcc   :  { %935 = vpow2.f32 %v322_v43  ;;  %v1075_v3 = vand.u32 4294901760, %v340_v59  ;;  %v463_v8 = vsub.f32 %v341_v56, %v1071_v63  ;;  %v350_v43 = vld [vmem:[%s1136_s4 + $0x10] sm:$0xff]  ;;  %v355_v56 = vpop.permute.xlu1 %354 }
  0xcd   :  { %v330_v48 = vmul.f32 1.6732632, %v917_v45  ;;  %364 = vperm.xlu2 %928, %v350_v43  }
  0xce   :  { %v469_v12 = vsub.f32 %v340_v59, %v1075_v3  ;;  %v464_v16 = vand.u32 4294901760, %v463_v8  ;;  %v360_v59 = vpop.permute.xlu0 %359 }
  0xcf   :  { %v338_v50 = vsel %vm334_vm4, %v306_v27, %v330_v48  ;;  %v422_v27 = vsub.f32 %v380_v14, %v1087_v19 }
  0xd0   :  { %v342_v52 = vmul.f32 1.050701, %v338_v50  ;;  %v470_v22 = vand.u32 4294901760, %v469_v12  ;;  %v465_v25 = vsub.f32 %v463_v8, %v464_v16 }
  0xd1   :  { %v423_v33 = vand.u32 4294901760, %v422_v27 }
  0xd2   :  { %v936_v55 = vpop.eup %935  ;;  %v1068_v60 = vand.u32 4294901760, %v342_v52  ;;  %v471_v29 = vsub.f32 %v469_v12, %v470_v22  ;;  %v466_v31 = vand.u32 4294901760, %v465_v25 }
  0xd3   :  { %v918_v57 = vadd.f32 -1.0, %v936_v55  ;;  %v424_v36 = vsub.f32 %v422_v27, %v423_v33 }
  0xd4   :  { %v457_v5 = vsub.f32 %v342_v52, %v1068_v60  ;;  %v472_v35 = vand.u32 4294901760, %v471_v29 }
  0xd5   :  { %v331_v62 = vmul.f32 1.6732632, %v918_v57  ;;  %v425_v38 = vand.u32 4294901760, %v424_v36  ;;  %699 = vperm.xlu2 %928, %v696_v44   ;;  %v695_v44 = vld [vmem:[%s1137_s5] sm:$0xff]  ;;  %s974_s5 = smov [#allocation2]  }
  0xd6   :  { %v458_v13 = vand.u32 4294901760, %v457_v5  ;;  %s904_s9 = sshll.u32 %s974_s5, 4  ;;  %s905_s9 = int_to_ptr.vmem [resolvable:$true] %s904_s9 }
  0xd7   :  { %v339_v0 = vsel %vm335_vm6, %v310_v37, %v331_v62  ;;  %v430_v37 = vsub.f32 %v383_v30, %v429_v34 }
  0xd8   :  { %v343_v4 = vmul.f32 1.050701, %v339_v0  ;;  %v459_v21 = vsub.f32 %v457_v5, %v458_v13 }
  0xd9   :  { %v431_v39 = vand.u32 4294901760, %v430_v37 }
  0xda   :  { %v397_v7 = vand.u32 4294901760, %v343_v4  ;;  %v460_v28 = vand.u32 4294901760, %v459_v21 }
  0xdb   :  { %v432_v40 = vsub.f32 %v430_v37, %v431_v39 }
  0xdc   :  { %v451_v11 = vsub.f32 %v343_v4, %v397_v7  ;;  %398 = vmatpush.msrb.mxu2 %v397_v7  ;;  %549 = vmatpush.msra.mxu1 %v397_v7 }
  0xdd   :  { %v433_v42 = vand.u32 4294901760, %v432_v40 }
  0xde   :  { %400 = vmatpush.msrb.mxu2 %v1068_v60  ;;  %505 = vmatpush.msra.mxu0 %v451_v11  ;;  %v452_v15 = vand.u32 4294901760, %v451_v11 }
  0xdf   :  { %551 = vmatpush.msra.mxu1 %v1068_v60 }
  0xe0   :  { %402 = vmatpush.msrb.mxu2 %v1071_v63  ;;  %508 = vmatpush.msra.mxu0 %v457_v5  ;;  %v453_v20 = vsub.f32 %v451_v11, %v452_v15 }
  0xe1   :  { %553 = vmatpush.msra.mxu1 %v1071_v63 }
  0xe2   :  { %404 = vmatpush.msrb.mxu2 %v1075_v3  ;;  %511 = vmatpush.msra.mxu0 %v463_v8  ;;  %v454_v24 = vand.u32 4294901760, %v453_v20 }
  0xe3   :  { %555 = vmatpush.msra.mxu1 %v1075_v3  ;;  %410 = vmatmul.f32.vlgmr.msrb.gmra.mxu2 %v409_v17 }
  0xe4   :  { %596 = vmatpush.msra.mxu2 %v452_v15  ;;  %455 = vmatpush.msrb.mxu3 %v454_v24 }
  0xe5   :  { %514 = vmatpush.msra.mxu0 %v469_v12  ;;  %559 = vmatmul.f32.vlgmr.msra.gmra.mxu1 %v407_v1 }
  0xe6   :  { %600 = vmatpush.msra.mxu2 %v458_v13  ;;  %461 = vmatpush.msrb.mxu3 %v460_v28 }
  0xe7   :  { %517 = vmatmul.f32.vlgmr.msra.gmra.mxu0 %v406_v58 }
  0xe8   :  { %604 = vmatpush.msra.mxu2 %v464_v16  ;;  %467 = vmatpush.msrb.mxu3 %v466_v31 }
  0xea   :  { %608 = vmatpush.msra.mxu2 %v470_v22  ;;  %473 = vmatpush.msrb.mxu3 %v472_v35 }
  0xeb   :  { %418 = vmatmul.f32.gmra.mxu2 %v417_v32  ;;  %475 = vmatmul.f32.vlgmr.msrb.gmra.mxu3 %v1062_v51 }
  0xec   :  { %639 = vmatpush.msra.mxu3 %v397_v7 }
  0xed   :  { %565 = vmatmul.f32.gmra.mxu1 %v415_v18 }
  0xee   :  { %641 = vmatpush.msra.mxu3 %v1068_v60 }
  0xef   :  { %522 = vmatmul.f32.gmra.mxu0 %v414_v10  ;;  %v370_v55 = vpop.permute.xlu2 %369 }
  0xf0   :  { %643 = vmatpush.msra.mxu3 %v1071_v63 }
  0xf2   :  { %645 = vmatpush.msra.mxu3 %v1075_v3 }
  0xf3   :  { %426 = vmatmul.f32.gmra.mxu2 %v425_v38  ;;  %479 = vmatmul.f32.gmra.mxu3 %v1073_v2 }
  0xf5   :  { %571 = vmatmul.f32.gmra.mxu1 %v423_v33 }
  0xf7   :  { %527 = vmatmul.f32.gmra.mxu0 %v422_v27 }
  0xfb   :  { %434 = vmatmul.f32.gmra.mxu2 %v433_v42  ;;  %483 = vmatmul.f32.gmra.mxu3 %v1087_v19 }
  0xfd   :  { %577 = vmatmul.f32.gmra.mxu1 %v431_v39 }
  0xff   :  { %532 = vmatmul.f32.gmra.mxu0 %v430_v37 }
 0x103   :  { %487 = vmatmul.f32.gmra.mxu3 %v429_v34  ;;  %610 = vmatmul.f32.vlgmr.msra.gmra.mxu2 %v1062_v51 }
 0x10b   :  { %614 = vmatmul.f32.gmra.mxu2 %v1073_v2  ;;  %647 = vmatmul.f32.vlgmr.msra.gmra.mxu3 %v1062_v51 }
 0x113   :  { %618 = vmatmul.f32.gmra.mxu2 %v1087_v19  ;;  %651 = vmatmul.f32.gmra.mxu3 %v1073_v2 }
 0x11b   :  { %622 = vmatmul.f32.gmra.mxu2 %v429_v34  ;;  %655 = vmatmul.f32.gmra.mxu3 %v1087_v19 }
 0x123   :  { %659 = vmatmul.f32.gmra.mxu3 %v429_v34 }
 0x127   :  { %v365_v1 = vpop.permute.xlu2 %364 }
 0x162   :  { %v560_v54 = vpop.f32.mrf.mxu1 }
 0x164   :  { %v518_v50 = vpop.f32.mrf.mxu0 }
 0x166   :  { %v411_v45 = vpop.f32.mrf.mxu2 }
 0x167   :  { %v412_v58 = vadd.f32 %v411_v45, %v355_v56 }
 0x16a   :  { %v566_v0 = vpop.f32.mrf.mxu1 }
 0x16c   :  { %v523_v60 = vpop.f32.mrf.mxu0 }
 0x16e   :  { %v419_v46 = vpop.f32.mrf.mxu2  ;;  %v476_v47 = vpop.f32.mrf.mxu3 }
 0x16f   :  { %v420_v61 = vadd.f32 %v419_v46, %v360_v59  ;;  %v477_v62 = vadd.f32 %v476_v47, %v412_v58 }
 0x171   :  { %v519_v2 = vadd.f32 %v518_v50, %v477_v62 }
 0x172   :  { %v572_v14 = vpop.f32.mrf.mxu1 }
 0x173   :  { %v561_v7 = vadd.f32 %v560_v54, %v519_v2 }
 0x174   :  { %v528_v8 = vpop.f32.mrf.mxu0 }
 0x176   :  { %v427_v48 = vpop.f32.mrf.mxu2  ;;  %v480_v49 = vpop.f32.mrf.mxu3 }
 0x177   :  { %v481_v63 = vadd.f32 %v480_v49, %v420_v61  ;;  %v428_v6 = vadd.f32 %v427_v48, %v365_v1  ;;  %v703_v49 = vsel %vm372_vm2, %v695_v44, 0 }
 0x179   :  { %v524_v5 = vadd.f32 %v523_v60, %v481_v63 }
 0x17a   :  { %v578_v31 = vpop.f32.mrf.mxu1 }
 0x17b   :  { %v567_v9 = vadd.f32 %v566_v0, %v524_v5 }
 0x17c   :  { %v533_v25 = vpop.f32.mrf.mxu0 }
 0x17e   :  { %v435_v52 = vpop.f32.mrf.mxu2  ;;  %v484_v53 = vpop.f32.mrf.mxu3 }
 0x17f   :  { %v485_v10 = vadd.f32 %v484_v53, %v428_v6  ;;  %v436_v16 = vadd.f32 %v435_v52, %v370_v55  ;;  %v1123_v55 = vand.u32 4294901760, %v703_v49 }
 0x181   :  { %v529_v17 = vadd.f32 %v528_v8, %v485_v10  ;;  %v726_v60 = vsub.f32 %v703_v49, %v1123_v55 }
 0x183   :  { %v573_v22 = vadd.f32 %v572_v14, %v529_v17  ;;  %v727_v2 = vand.u32 4294901760, %v726_v60 }
 0x185   :  { %v728_v8 = vsub.f32 %v726_v60, %v727_v2 }
 0x186   :  { %v488_v51 = vpop.f32.mrf.mxu3  ;;  %v611_v57 = vpop.f32.mrf.mxu2 }
 0x187   :  { %v612_v11 = vadd.f32 %v611_v57, %v561_v7  ;;  %v489_v23 = vadd.f32 %v488_v51, %v436_v16  ;;  %v729_v14 = vand.u32 4294901760, %v728_v8 }
 0x189   :  { %v534_v29 = vadd.f32 %v533_v25, %v489_v23  ;;  %v700_v25 = vpop.permute.xlu2 %699 }
 0x18b   :  { %v579_v34 = vadd.f32 %v578_v31, %v534_v29 }
 0x18e   :  { %v615_v3 = vpop.f32.mrf.mxu2  ;;  %v648_v4 = vpop.f32.mrf.mxu3 }
 0x18f   :  { %v616_v12 = vadd.f32 %v615_v3, %v567_v9  ;;  %v649_v13 = vadd.f32 %v648_v4, %v612_v11 }
 0x191   :  { %v663_v20 = vmin.f32 %v649_v13, 0.0  ;;  %vm683_vm9 = vcmp.gt.f32.partialorder %v649_v13, 0.0 }
 0x193   :  { %v667_v26 = vmul.f32 1.442695, %v663_v20 }
 0x196   :  { %v652_v15 = vpop.f32.mrf.mxu3  ;;  %v619_v19 = vpop.f32.mrf.mxu2 }
 0x197   :  { %v653_v18 = vadd.f32 %v652_v15, %v616_v12  ;;  %v620_v27 = vadd.f32 %v619_v19, %v573_v22 }
 0x199   :  { %v664_v21 = vmin.f32 %v653_v18, 0.0  ;;  %vm684_vm7 = vcmp.gt.f32.partialorder %v653_v18, 0.0 }
 0x19b   :  { %v669_v24 = vmul.f32 1.442695, %v664_v21 }
 0x19d   :  { %937 = vpow2.f32 %v669_v24 }
 0x19e   :  { %v656_v28 = vpop.f32.mrf.mxu3  ;;  %939 = vpow2.f32 %v667_v26  ;;  %v623_v33 = vpop.f32.mrf.mxu2 }
 0x19f   :  { %v657_v30 = vadd.f32 %v656_v28, %v620_v27  ;;  %v624_v37 = vadd.f32 %v623_v33, %v579_v34 }
 0x1a1   :  { %v665_v32 = vmin.f32 %v657_v30, 0.0  ;;  %vm685_vm8 = vcmp.gt.f32.partialorder %v657_v30, 0.0 }
 0x1a3   :  { %v671_v35 = vmul.f32 1.442695, %v665_v32  ;;  %v938_v36 = vpop.eup %937 }
 0x1a4   :  { %v940_v39 = vpop.eup %939  ;;  %v920_v41 = vadd.f32 -1.0, %v938_v36 }
 0x1a5   :  { %941 = vpow2.f32 %v671_v35  ;;  %v919_v43 = vadd.f32 -1.0, %v940_v39 }
 0x1a6   :  { %v660_v38 = vpop.f32.mrf.mxu3  ;;  %v680_v47 = vmul.f32 1.6732632, %v920_v41 }
 0x1a7   :  { %v661_v40 = vadd.f32 %v660_v38, %v624_v37  ;;  %v679_v50 = vmul.f32 1.6732632, %v919_v43 }
 0x1a8   :  { %v688_v53 = vsel %vm684_vm7, %v653_v18, %v680_v47 }
 0x1a9   :  { %v666_v42 = vmin.f32 %v661_v40, 0.0  ;;  %v687_v51 = vsel %vm683_vm9, %v649_v13, %v679_v50  ;;  %v692_v58 = vmul.f32 1.050701, %v688_v53  ;;  %vm686_vm10 = vcmp.gt.f32.partialorder %v661_v40, 0.0 }
 0x1aa   :  { %v691_v61 = vmul.f32 1.050701, %v687_v51 }
 0x1ab   :  { %v942_v45 = vpop.eup %941  ;;  %v673_v46 = vmul.f32 1.442695, %v666_v42  ;;  %v721_v0 = vand.u32 4294901760, %v692_v58 }
 0x1ac   :  { %v921_v48 = vadd.f32 -1.0, %v942_v45  ;;  %v723_v3 = vand.u32 4294901760, %v691_v61 }
 0x1ad   :  { %943 = vpow2.f32 %v673_v46  ;;  %v759_v7 = vsub.f32 %v692_v58, %v721_v0 }
 0x1ae   :  { %v681_v52 = vmul.f32 1.6732632, %v921_v48  ;;  %v765_v10 = vsub.f32 %v691_v61, %v723_v3 }
 0x1af   :  { %v760_v13 = vand.u32 4294901760, %v759_v7 }
 0x1b0   :  { %v689_v54 = vsel %vm685_vm8, %v657_v30, %v681_v52  ;;  %v766_v17 = vand.u32 4294901760, %v765_v10 }
 0x1b1   :  { %v693_v56 = vmul.f32 1.050701, %v689_v54  ;;  %v761_v19 = vsub.f32 %v759_v7, %v760_v13 }
 0x1b2   :  { %v767_v21 = vsub.f32 %v765_v10, %v766_v17 }
 0x1b3   :  { %v944_v57 = vpop.eup %943  ;;  %v719_v62 = vand.u32 4294901760, %v693_v56  ;;  %v762_v22 = vand.u32 4294901760, %v761_v19 }
 0x1b4   :  { %v922_v59 = vadd.f32 -1.0, %v944_v57  ;;  %v768_v23 = vand.u32 4294901760, %v767_v21 }
 0x1b5   :  { %v753_v5 = vsub.f32 %v693_v56, %v719_v62 }
 0x1b6   :  { %v682_v63 = vmul.f32 1.6732632, %v922_v59 }
 0x1b7   :  { %v754_v11 = vand.u32 4294901760, %v753_v5 }
 0x1b8   :  { %v690_v1 = vsel %vm686_vm10, %v661_v40, %v682_v63 }
 0x1b9   :  { %v694_v4 = vmul.f32 1.050701, %v690_v1  ;;  %v755_v16 = vsub.f32 %v753_v5, %v754_v11 }
 0x1bb   :  { %v717_v6 = vand.u32 4294901760, %v694_v4  ;;  %v756_v20 = vand.u32 4294901760, %v755_v16 }
 0x1bd   :  { %v747_v9 = vsub.f32 %v694_v4, %v717_v6  ;;  %718 = vmatpush.msrb.mxu0 %v717_v6  ;;  %818 = vmatpush.msrb.mxu3 %v717_v6 }
 0x1bf   :  { %720 = vmatpush.msrb.mxu0 %v719_v62  ;;  %789 = vmatpush.msrb.mxu2 %v747_v9  ;;  %v748_v12 = vand.u32 4294901760, %v747_v9 }
 0x1c0   :  { %820 = vmatpush.msrb.mxu3 %v719_v62 }
 0x1c1   :  { %722 = vmatpush.msrb.mxu0 %v721_v0  ;;  %792 = vmatpush.msrb.mxu2 %v753_v5  ;;  %v749_v15 = vsub.f32 %v747_v9, %v748_v12 }
 0x1c2   :  { %822 = vmatpush.msrb.mxu3 %v721_v0 }
 0x1c3   :  { %724 = vmatpush.msrb.mxu0 %v723_v3  ;;  %795 = vmatpush.msrb.mxu2 %v759_v7  ;;  %v750_v18 = vand.u32 4294901760, %v749_v15 }
 0x1c4   :  { %824 = vmatpush.msrb.mxu3 %v723_v3  ;;  %730 = vmatmul.f32.vlgmr.msrb.gmra.mxu0 %v729_v14 }
 0x1c5   :  { %847 = vmatpush.msra.mxu0 %v748_v12  ;;  %751 = vmatpush.msrb.mxu1 %v750_v18 }
 0x1c6   :  { %798 = vmatpush.msrb.mxu2 %v765_v10  ;;  %828 = vmatmul.f32.vlgmr.msrb.gmra.mxu3 %v727_v2 }
 0x1c7   :  { %851 = vmatpush.msra.mxu0 %v754_v11  ;;  %757 = vmatpush.msrb.mxu1 %v756_v20 }
 0x1c8   :  { %801 = vmatmul.f32.vlgmr.msrb.gmra.mxu2 %v726_v60 }
 0x1c9   :  { %855 = vmatpush.msra.mxu0 %v760_v13  ;;  %763 = vmatpush.msrb.mxu1 %v762_v22 }
 0x1cb   :  { %859 = vmatpush.msra.mxu0 %v766_v17  ;;  %769 = vmatpush.msrb.mxu1 %v768_v23 }
 0x1cc   :  { %771 = vmatmul.f32.vlgmr.msrb.gmra.mxu1 %v1123_v55  ;;  %861 = vmatmul.f32.vlgmr.msra.gmra.mxu0 %v1123_v55 }
 0x1cd   :  { %878 = vmatpush.msra.mxu1 %v717_v6 }
 0x1cf   :  { %880 = vmatpush.msra.mxu1 %v719_v62 }
 0x1d1   :  { %882 = vmatpush.msra.mxu1 %v721_v0 }
 0x1d3   :  { %884 = vmatpush.msra.mxu1 %v723_v3 }
 0x1d4   :  { %886 = vmatmul.f32.vlgmr.msra.gmra.mxu1 %v1123_v55 }
 0x241   :  { %v731_v24 = vpop.f32.mrf.mxu0 }
 0x242   :  { %v732_v26 = vadd.f32 %v731_v24, %v700_v25 }
 0x249   :  { %v772_v27 = vpop.f32.mrf.mxu1  ;;  %v829_v30 = vpop.f32.mrf.mxu3 }
 0x24a   :  { %v773_v28 = vadd.f32 %v772_v27, %v732_v26  ;;  %v862_v32 = vpop.f32.mrf.mxu0 }
 0x24b   :  { %v802_v29 = vpop.f32.mrf.mxu2 }
 0x24c   :  { %v803_v31 = vadd.f32 %v802_v29, %v773_v28 }
 0x24e   :  { %v830_v33 = vadd.f32 %v829_v30, %v803_v31 }
 0x250   :  { %v863_v34 = vadd.f32 %v862_v32, %v830_v33 }
 0x251   :  { %v887_v35 = vpop.f32.mrf.mxu1 }
 0x252   :  { %v888_v36 = vadd.f32 %v887_v35, %v863_v34 }
 0x254   :  { %v890_v37 = vmin.f32 %v888_v36, 0.0  ;;  %vm895_vm11 = vcmp.gt.f32.partialorder %v888_v36, 0.0 }
 0x256   :  { %v891_v38 = vmul.f32 1.442695, %v890_v37 }
 0x258   :  { %945 = vpow2.f32 %v891_v38 }
 0x25e   :  { %v946_v39 = vpop.eup %945 }
 0x25f   :  { %v923_v40 = vadd.f32 -1.0, %v946_v39 }
 0x261   :  { %v894_v41 = vmul.f32 1.6732632, %v923_v40 }
 0x263   :  { %v896_v42 = vsel %vm895_vm11, %v888_v36, %v894_v41 }
 0x264   :  { %v897_v43 = vmul.f32 1.050701, %v896_v42 }
 0x266   :  { %898 = vst [vmem:[#allocation2] sm:$0xff] %v897_v43 }
 0x267   :  { %909 = dma.vmem_to_hbm [thread:$0]  %s905_s9, 128, %s907_s12, [#allocation3]  }
 0x268   :  { %971 = dma.done.wait [#allocation3], 128  }
 0x269   :  { %972 = vsyncadd [#allocation3], 4294967168 }
 0x26a   :  { %914 = vsyncpa [#allocation3], 1 }

</bundles_post_ra>
